<compile_context>
chip_gen: v7x
topology: tpu7x:2x2x1
jax: 0.10.0
libtpu: 0.0.40
codegen_flags: <defaults>
</compile_context>

<pallas_src>
import jax
import jax.numpy as jnp
from jax import lax
from jax.experimental import pallas as pl
from jax.experimental.pallas import tpu as pltpu


def _mlp_hidden(xs_ref, xa_ref, w1s_ref, w1a_ref, b1_ref, w2_ref, b2_ref):
    """relu(linear2(relu(linear1([state|action])))) for one row tile.

    The concat is replaced by a split-K first matmul, so the concatenated
    activation never round-trips through HBM.  bf16 operands, f32 accumulate.
    """
    h1 = jnp.dot(xs_ref[...], w1s_ref[...], preferred_element_type=jnp.float32)
    h1 = h1 + jnp.dot(xa_ref[...], w1a_ref[...], preferred_element_type=jnp.float32)
    h1 = jnp.maximum(h1 + b1_ref[...], 0.0).astype(jnp.bfloat16)
    h2 = jnp.dot(h1, w2_ref[...], preferred_element_type=jnp.float32)
    return jnp.maximum(h2 + b2_ref[...], 0.0)            # (TR, Hp) f32


def _critic_kernel_q(xs_ref, xa_ref, w1s_ref, w1a_ref, b1_ref, w2_ref, b2_ref,
                     w3_ref, b3_ref, o_ref):
    """output_size == 1 path: lane-dense (1, TR) output row per tile."""
    h2 = _mlp_hidden(xs_ref, xa_ref, w1s_ref, w1a_ref, b1_ref, w2_ref,
                     b2_ref).astype(jnp.bfloat16)
    # Compute w3 . h2^T so the per-tile result lands as a lane-dense (1, TR)
    # row (full 128-lane unmasked stores) instead of a (TR, 1) column, which
    # would force masked narrow vst's and tiny writeback DMAs.
    y = lax.dot_general(w3_ref[...], h2, (((1,), (1,)), ((), ())),
                        preferred_element_type=jnp.float32)      # (1, TR)
    o_ref[...] = y + b3_ref[...]


def _critic_kernel_wide(xs_ref, xa_ref, w1s_ref, w1a_ref, b1_ref, w2_ref,
                        b2_ref, w3_ref, b3_ref, o_ref):
    """General output_size > 1 path: plain (TR, out) output block."""
    h2 = _mlp_hidden(xs_ref, xa_ref, w1s_ref, w1a_ref, b1_ref, w2_ref,
                     b2_ref).astype(jnp.bfloat16)
    y = jnp.dot(h2, w3_ref[...], preferred_element_type=jnp.float32)
    o_ref[...] = y + b3_ref[...]


def _round_up(x, m):
    return ((x + m - 1) // m) * m


def critic_forward(state, action, params):
    """state: (B, S, Ds), action: (B, S, Da) -> (B, S, output_size)."""
    w1, b1, w2, b2, w3, b3 = params
    B, S, Ds = state.shape
    Da = action.shape[2]
    In = Ds + Da
    H = w1.shape[1]
    out_size = w3.shape[1]
    assert w1.shape[0] == In, "w1 must have shape (Ds + Da, hidden)"

    R = B * S
    Hp = _round_up(H, 128)            # full 128-lane hidden width (zero-padded)

    # Row tile: multiple of 128 (keeps the transposed output block lane-dense),
    # capped at 512 rows.  With these feature widths a tile uses well under
    # 1 MiB of VMEM, so it fits the 32 MiB scoped default on every generation
    # (including v7x's smaller 64 MiB physical VMEM) with full pipeline depth.
    TR = min(512, _round_up(R, 128))
    Rp = _round_up(R, TR)             # zero-pad the row tail to a whole tile
    NT = Rp // TR

    # bf16 storage for activations/weights; biases + accumulation stay f32.
    xs = jnp.pad(state.reshape(R, Ds).astype(jnp.bfloat16), ((0, Rp - R), (0, 0)))
    xa = jnp.pad(action.reshape(R, Da).astype(jnp.bfloat16), ((0, Rp - R), (0, 0)))

    # Zero-pad hidden width to Hp.  Exact: padded weight rows/cols are zero and
    # ReLU(0 + 0) == 0, so padded hidden channels stay identically zero.
    w1p = jnp.pad(w1.astype(jnp.bfloat16), ((0, 0), (0, Hp - H)))
    w1s, w1a = w1p[:Ds], w1p[Ds:]                         # split-K: no concat
    b1p = jnp.pad(b1.astype(jnp.float32), ((0, 0), (0, Hp - H)))
    w2p = jnp.pad(w2.astype(jnp.bfloat16), ((0, Hp - H), (0, Hp - H)))
    b2p = jnp.pad(b2.astype(jnp.float32), ((0, 0), (0, Hp - H)))
    b3f = b3.astype(jnp.float32)

    flops = 2 * Rp * (In * Hp + Hp * Hp + Hp * out_size)

    row_spec = lambda d: pl.BlockSpec((TR, d), lambda i: (i, 0))
    const = lambda shape: pl.BlockSpec(shape, lambda i: (0, 0))   # VMEM-resident
    weight_specs = [const((Ds, Hp)), const((Da, Hp)), const((1, Hp)),
                    const((Hp, Hp)), const((1, Hp))]

    if out_size == 1:
        # w3 stored as a (1, Hp) row; output written transposed as (1, Rp).
        w3t = jnp.pad(w3.T.astype(jnp.bfloat16), ((0, 0), (0, Hp - H)))
        bytes_accessed = ((xs.size + xa.size + w1p.size + w2p.size + w3t.size) * 2
                          + (b1p.size + b2p.size + b3f.size + Rp) * 4)
        out_row = pl.pallas_call(
            _critic_kernel_q,
            out_shape=jax.ShapeDtypeStruct((1, Rp), jnp.float32),
            grid=(NT,),
            in_specs=[row_spec(Ds), row_spec(Da), *weight_specs,
                      const((1, Hp)), const((1, 1))],
            out_specs=pl.BlockSpec((1, TR), lambda i: (0, i)),
            compiler_params=pltpu.CompilerParams(
                dimension_semantics=("parallel",)),
            cost_estimate=pl.CostEstimate(flops=flops, transcendentals=0,
                                          bytes_accessed=bytes_accessed),
        )(xs, xa, w1s, w1a, b1p, w2p, b2p, w3t, b3f)
        out = out_row[0, :R]
    else:
        w3p = jnp.pad(w3.astype(jnp.bfloat16), ((0, Hp - H), (0, 0)))
        bytes_accessed = ((xs.size + xa.size + w1p.size + w2p.size + w3p.size) * 2
                          + (b1p.size + b2p.size + b3f.size + Rp * out_size) * 4)
        out2d = pl.pallas_call(
            _critic_kernel_wide,
            out_shape=jax.ShapeDtypeStruct((Rp, out_size), jnp.float32),
            grid=(NT,),
            in_specs=[row_spec(Ds), row_spec(Da), *weight_specs,
                      const((Hp, out_size)), const((1, out_size))],
            out_specs=pl.BlockSpec((TR, out_size), lambda i: (i, 0)),
            compiler_params=pltpu.CompilerParams(
                dimension_semantics=("parallel",)),
            cost_estimate=pl.CostEstimate(flops=flops, transcendentals=0,
                                          bytes_accessed=bytes_accessed),
        )(xs, xa, w1s, w1a, b1p, w2p, b2p, w3p, b3f)
        out = out2d[:R]

    return out.reshape(B, S, out_size)


def init_critic_params(key, input_size, hidden_size, output_size):
    """Deterministic init mimicking nn.Linear's U(-1/sqrt(fan_in), 1/sqrt(fan_in)).
    Weights stored transposed vs PyTorch: shape (in_features, out_features)."""
    ks = jax.random.split(key, 6)

    def linear(kw, kb, fan_in, fan_out):
        bound = 1.0 / jnp.sqrt(jnp.float32(fan_in))
        w = jax.random.uniform(kw, (fan_in, fan_out), jnp.float32, -bound, bound)
        b = jax.random.uniform(kb, (1, fan_out), jnp.float32, -bound, bound)
        return w, b

    w1, b1 = linear(ks[0], ks[1], input_size, hidden_size)
    w2, b2 = linear(ks[2], ks[3], hidden_size, hidden_size)
    w3, b3 = linear(ks[4], ks[5], hidden_size, output_size)
    return (w1, b1, w2, b2, w3, b3)


if __name__ == "__main__":
    # Small shapes consistent with the module's forward:
    #   state (B, S, Ds), action (B, S, Da), input_size = Ds + Da
    B, S = 2, 8
    state_dim, action_dim = 12, 4
    input_size = state_dim + action_dim       # 16
    hidden_size = 64                          # matches the reference script
    output_size = 1

    key = jax.random.PRNGKey(0)
    k_state, k_action, k_params = jax.random.split(key, 3)

    state = jax.random.normal(k_state, (B, S, state_dim), jnp.float32)
    action = jax.random.normal(k_action, (B, S, action_dim), jnp.float32)
    params = init_critic_params(k_params, input_size, hidden_size, output_size)

    critic = jax.jit(critic_forward)
    out = critic(state, action, params)
    jax.block_until_ready(out)

    # Pure-JAX reference mirroring the kernel's numerics
    # (bf16 storage, f32 accumulation / biases / ReLU).
    w1, b1, w2, b2, w3, b3 = params
    xb = jnp.concatenate([state, action], axis=2).astype(jnp.bfloat16)
    h1 = jnp.maximum(jnp.dot(xb, w1.astype(jnp.bfloat16),
                             preferred_element_type=jnp.float32) + b1, 0.0)
    h2 = jnp.maximum(jnp.dot(h1.astype(jnp.bfloat16), w2.astype(jnp.bfloat16),
                             preferred_element_type=jnp.float32) + b2, 0.0)
    ref = jnp.dot(h2.astype(jnp.bfloat16), w3.astype(jnp.bfloat16),
                  preferred_element_type=jnp.float32) + b3

    assert out.shape == (B, S, output_size), out.shape
    assert jnp.allclose(out, ref, atol=2e-3, rtol=2e-3), (
        "mismatch vs reference, max abs diff = %f"
        % float(jnp.max(jnp.abs(out - ref))))

    print("KERNEL_OK")
</pallas_src>

<mosaic_0001>
module attributes {stable_mosaic.version = 11 : i64} {
  func.func @_critic_kernel_q(%arg0: i32, %arg1: memref<128x12xbf16, #tpu.memory_space<vmem>>, %arg2: memref<128x4xbf16, #tpu.memory_space<vmem>>, %arg3: memref<12x128xbf16, #tpu.memory_space<vmem>>, %arg4: memref<4x128xbf16, #tpu.memory_space<vmem>>, %arg5: memref<1x128xf32, #tpu.memory_space<vmem>>, %arg6: memref<128x128xbf16, #tpu.memory_space<vmem>>, %arg7: memref<1x128xf32, #tpu.memory_space<vmem>>, %arg8: memref<1x128xbf16, #tpu.memory_space<vmem>>, %arg9: memref<1x1xf32, #tpu.memory_space<vmem>>, %arg10: memref<1x128xf32, #tpu.memory_space<vmem>>) attributes {dimension_semantics = [#tpu.dimension_semantics<parallel>], iteration_bounds = array<i64: 1>, scalar_prefetch = 0 : i64, scratch_operands = 0 : i64, tpu.core_type = #tpu.core_type<tc>, window_params = [{transform_indices = @transform_0, window_bounds = array<i64: 128, 12>}, {transform_indices = @transform_1, window_bounds = array<i64: 128, 4>}, {pipeline_mode = #tpu.pipeline_mode<synchronous>, transform_indices = @transform_2, window_bounds = array<i64: 12, 128>}, {pipeline_mode = #tpu.pipeline_mode<synchronous>, transform_indices = @transform_3, window_bounds = array<i64: 4, 128>}, {pipeline_mode = #tpu.pipeline_mode<synchronous>, transform_indices = @transform_4, window_bounds = array<i64: 1, 128>}, {pipeline_mode = #tpu.pipeline_mode<synchronous>, transform_indices = @transform_5, window_bounds = array<i64: 128, 128>}, {pipeline_mode = #tpu.pipeline_mode<synchronous>, transform_indices = @transform_6, window_bounds = array<i64: 1, 128>}, {pipeline_mode = #tpu.pipeline_mode<synchronous>, transform_indices = @transform_7, window_bounds = array<i64: 1, 128>}, {pipeline_mode = #tpu.pipeline_mode<synchronous>, transform_indices = @transform_8, window_bounds = array<i64: 1, 1>}, {transform_indices = @transform_9, window_bounds = array<i64: 1, 128>}]} {
    %c0 = arith.constant 0 : index
    %c0_0 = arith.constant 0 : index
    %0 = vector.load %arg1[%c0, %c0_0] : memref<128x12xbf16, #tpu.memory_space<vmem>>, vector<128x12xbf16>
    %c0_1 = arith.constant 0 : index
    %c0_2 = arith.constant 0 : index
    %1 = vector.load %arg3[%c0_1, %c0_2] : memref<12x128xbf16, #tpu.memory_space<vmem>>, vector<12x128xbf16>
    %cst = arith.constant dense<0.000000e+00> : vector<128x128xf32>
    %2 = tpu.matmul %0, %1, %cst {dimension_numbers = #tpu.dot_dimension_numbers<[1], [0], [0], [1], [0, 0, 1, 1], [], []>} : vector<128x12xbf16>, vector<12x128xbf16>, vector<128x128xf32> -> vector<128x128xf32>
    %c0_3 = arith.constant 0 : index
    %c0_4 = arith.constant 0 : index
    %3 = vector.load %arg2[%c0_3, %c0_4] : memref<128x4xbf16, #tpu.memory_space<vmem>>, vector<128x4xbf16>
    %c0_5 = arith.constant 0 : index
    %c0_6 = arith.constant 0 : index
    %4 = vector.load %arg4[%c0_5, %c0_6] : memref<4x128xbf16, #tpu.memory_space<vmem>>, vector<4x128xbf16>
    %cst_7 = arith.constant dense<0.000000e+00> : vector<128x128xf32>
    %5 = tpu.matmul %3, %4, %cst_7 {dimension_numbers = #tpu.dot_dimension_numbers<[1], [0], [0], [1], [0, 0, 1, 1], [], []>} : vector<128x4xbf16>, vector<4x128xbf16>, vector<128x128xf32> -> vector<128x128xf32>
    %6 = arith.addf %2, %5 : vector<128x128xf32>
    %c0_8 = arith.constant 0 : index
    %c0_9 = arith.constant 0 : index
    %7 = vector.load %arg5[%c0_8, %c0_9] : memref<1x128xf32, #tpu.memory_space<vmem>>, vector<1x128xf32>
    %8 = vector.broadcast %7 : vector<1x128xf32> to vector<128x128xf32>
    %9 = arith.addf %6, %8 : vector<128x128xf32>
    %cst_10 = arith.constant 0.000000e+00 : f32
    %10 = vector.broadcast %cst_10 : f32 to vector<128x128xf32>
    %11 = arith.maximumf %9, %10 : vector<128x128xf32>
    %12 = arith.truncf %11 : vector<128x128xf32> to vector<128x128xbf16>
    %c0_11 = arith.constant 0 : index
    %c0_12 = arith.constant 0 : index
    %13 = vector.load %arg6[%c0_11, %c0_12] : memref<128x128xbf16, #tpu.memory_space<vmem>>, vector<128x128xbf16>
    %cst_13 = arith.constant dense<0.000000e+00> : vector<128x128xf32>
    %14 = tpu.matmul %12, %13, %cst_13 {dimension_numbers = #tpu.dot_dimension_numbers<[1], [0], [0], [1], [0, 0, 1, 1], [], []>} : vector<128x128xbf16>, vector<128x128xbf16>, vector<128x128xf32> -> vector<128x128xf32>
    %c0_14 = arith.constant 0 : index
    %c0_15 = arith.constant 0 : index
    %15 = vector.load %arg7[%c0_14, %c0_15] : memref<1x128xf32, #tpu.memory_space<vmem>>, vector<1x128xf32>
    %16 = vector.broadcast %15 : vector<1x128xf32> to vector<128x128xf32>
    %17 = arith.addf %14, %16 : vector<128x128xf32>
    %cst_16 = arith.constant 0.000000e+00 : f32
    %18 = vector.broadcast %cst_16 : f32 to vector<128x128xf32>
    %19 = arith.maximumf %17, %18 : vector<128x128xf32>
    %20 = arith.truncf %19 : vector<128x128xf32> to vector<128x128xbf16>
    %c0_17 = arith.constant 0 : index
    %c0_18 = arith.constant 0 : index
    %21 = vector.load %arg8[%c0_17, %c0_18] : memref<1x128xbf16, #tpu.memory_space<vmem>>, vector<1x128xbf16>
    %cst_19 = arith.constant dense<0.000000e+00> : vector<1x128xf32>
    %22 = tpu.matmul %21, %20, %cst_19 {dimension_numbers = #tpu.dot_dimension_numbers<[1], [1], [0], [0], [0, 0, 1, 0], [], []>} : vector<1x128xbf16>, vector<128x128xbf16>, vector<1x128xf32> -> vector<1x128xf32>
    %c0_20 = arith.constant 0 : index
    %c0_21 = arith.constant 0 : index
    %23 = vector.load %arg9[%c0_20, %c0_21] : memref<1x1xf32, #tpu.memory_space<vmem>>, vector<1x1xf32>
    %24 = vector.broadcast %23 : vector<1x1xf32> to vector<1x128xf32>
    %25 = arith.addf %22, %24 : vector<1x128xf32>
    %c0_22 = arith.constant 0 : index
    %c0_23 = arith.constant 0 : index
    %26 = vector.load %arg10[%c0_22, %c0_23] : memref<1x128xf32, #tpu.memory_space<vmem>>, vector<1x128xf32>
    tpu.vector_store %arg10[%c0_22, %c0_23], %25 {strides = array<i32>} : memref<1x128xf32, #tpu.memory_space<vmem>>, vector<1x128xf32>,
    return
  }
  func.func @transform_0(%arg0: i32) -> (i32, i32) {
    %c0_i32 = arith.constant 0 : i32
    %c0_i32_0 = arith.constant 0 : i32
    return %arg0, %c0_i32 : i32, i32
  }
  func.func @transform_1(%arg0: i32) -> (i32, i32) {
    %c0_i32 = arith.constant 0 : i32
    %c0_i32_0 = arith.constant 0 : i32
    return %arg0, %c0_i32 : i32, i32
  }
  func.func @transform_2(%arg0: i32) -> (i32, i32) {
    %c0_i32 = arith.constant 0 : i32
    %c0_i32_0 = arith.constant 0 : i32
    %c0_i32_1 = arith.constant 0 : i32
    return %c0_i32, %c0_i32_0 : i32, i32
  }
  func.func @transform_3(%arg0: i32) -> (i32, i32) {
    %c0_i32 = arith.constant 0 : i32
    %c0_i32_0 = arith.constant 0 : i32
    %c0_i32_1 = arith.constant 0 : i32
    return %c0_i32, %c0_i32_0 : i32, i32
  }
  func.func @transform_4(%arg0: i32) -> (i32, i32) {
    %c0_i32 = arith.constant 0 : i32
    %c0_i32_0 = arith.constant 0 : i32
    %c0_i32_1 = arith.constant 0 : i32
    return %c0_i32, %c0_i32_0 : i32, i32
  }
  func.func @transform_5(%arg0: i32) -> (i32, i32) {
    %c0_i32 = arith.constant 0 : i32
    %c0_i32_0 = arith.constant 0 : i32
    %c0_i32_1 = arith.constant 0 : i32
    return %c0_i32, %c0_i32_0 : i32, i32
  }
  func.func @transform_6(%arg0: i32) -> (i32, i32) {
    %c0_i32 = arith.constant 0 : i32
    %c0_i32_0 = arith.constant 0 : i32
    %c0_i32_1 = arith.constant 0 : i32
    return %c0_i32, %c0_i32_0 : i32, i32
  }
  func.func @transform_7(%arg0: i32) -> (i32, i32) {
    %c0_i32 = arith.constant 0 : i32
    %c0_i32_0 = arith.constant 0 : i32
    %c0_i32_1 = arith.constant 0 : i32
    return %c0_i32, %c0_i32_0 : i32, i32
  }
  func.func @transform_8(%arg0: i32) -> (i32, i32) {
    %c0_i32 = arith.constant 0 : i32
    %c0_i32_0 = arith.constant 0 : i32
    %c0_i32_1 = arith.constant 0 : i32
    return %c0_i32, %c0_i32_0 : i32, i32
  }
  func.func @transform_9(%arg0: i32) -> (i32, i32) {
    %c0_i32 = arith.constant 0 : i32
    %c0_i32_0 = arith.constant 0 : i32
    return %c0_i32, %arg0 : i32, i32
  }
}

</mosaic_0001>

<bundles_post_ra>
// kernel: squeeze.1
= control target key start
LH: loop header
LB: loop body
LE: loop exit
PB: predicated region body
PF: predicated region fallthrough
CT: control target
= control target key end

     0   :  { %s85_s0 = inlined_call_operand.vmem [shape: f32[16], index: 0, kind: input, shape index: {}]   ;;  %s86_s1 = inlined_call_operand.hbm [shape: f32[2,8,1], index: 1, kind: output, shape index: {}]  }
   0x1   :  { %v5_v0 = vld [vmem:[%s85_s0] sm:$0x1] }
   0x2   :  { %2 = vsyncpa [#allocation1], 0  ;;  %6 = vst [vmem:[#allocation3] sm:$0x1] %v5_v0  ;;  %vm8_vm0 = vcmask 64512   ;;  %s58_s0 = smov 120  }
   0x3   :  { %s59_s8 = smov [#allocation0]  }
   0x4   :  { %s26_s9 = sshll.u32 %s59_s8, 4  ;;  %s27_s9 = int_to_ptr.vmem [resolvable:$true] %s26_s9 }
   0x5   :  { %s34_s10 = scalar_lea.vmem %s27_s9, 32  ;;  %p39_p1 = scmp.lt.s32.totalorder %s27_s9, %s27_s9 }
   0x6   :  { %p35_p0 = scmp.ne.s32.totalorder %s27_s9, %s34_s10  ;;  %p40_p2 = scmp.lt.s32.totalorder %s34_s10, %s34_s10 }
   0x8   :  { %p41_p3 = por %p40_p2, %p39_p1 }
   0x9   :  { %v10_v1 = vld [vmem:[#allocation3] sm:$0x1]  }
   0xa   :  { %v7_v2 = vld [vmem:[#allocation3] sm:$0x1]   ;;  %11 = vrot.lane.b32.xlu0 %v10_v1, %s58_s0  ;;  %p42_p4 = pnand %p41_p3, %p35_p0 }
   0xb   :  { %9 = vst.msk [vmem:[#allocation2] sm:$0x1] %vm8_vm0, %v7_v2  }
  0x7c   :  { %v12_v3 = vpop.permute.xlu0 %11  }
  0x7d   :  { %15 = vst.msk [vmem:[#allocation2 + $0x1] sm:$0x1] %vm8_vm0, %v12_v3  }
  0x84   :  { %v19_v4 = vld [vmem:[#allocation2] sm:$0x3] }
  0x85   :  { %21 = vst [vmem:[#allocation0] sm:$0x3] %v19_v4 }
  0x86   :  { %45 = shalt.err (!%p42_p4)
}
  0x87   :  { %s46_s13 = scalar_lea.hbm %s86_s1, 32 }
  0x88   :  { %p47_p5 = scmp.ne.s32.totalorder %s86_s1, %s46_s13  ;;  %p50_p6 = scmp.lt.u32.totalorder %s46_s13, %s86_s1 }
  0x8a   :  { %p52_p7 = pnand %p50_p6, %p47_p5 }
  0x8c   :  { %55 = shalt.err (!%p52_p7)
}
  0x8d   :  { %29 = dma.vmem_to_hbm [thread:$0]  %s27_s9, 32, %s86_s1, [#allocation1]  }
  0x8e   :  { %56 = dma.done.wait [#allocation1], 32  }
  0x8f   :  { %57 = vsyncadd [#allocation1], 4294967264 }
  0x90   :  { %31 = vsyncpa [#allocation1], 1 }

// kernel: critic_forward.1
= control target key start
LH: loop header
LB: loop body
LE: loop exit
PB: predicated region body
PF: predicated region fallthrough
CT: control target
= control target key end

     0   :  { %vm135_vm0 = vcmask 1041408   ;;  %vm306_vm1 = vcmask 1045504   ;;  %vm110_vm2 = vcmask 31744   ;;  %vm281_vm3 = vcmask 97280   ;;  %s1112_s3 = inlined_call_operand.vmem [shape: bf16[4,128], index: 3, kind: input, shape index: {}]   ;;  %s1113_s2 = inlined_call_operand.vmem [shape: bf16[12,128], index: 2, kind: input, shape index: {}]   ;;  %s1114_s1 = inlined_call_operand.vmem [shape: bf16[128,4], index: 1, kind: input, shape index: {}]   ;;  %s1115_s0 = inlined_call_operand.vmem [shape: bf16[128,12], index: 0, kind: input, shape index: {}]   ;;  %s1116_s5 = inlined_call_operand.vmem [shape: bf16[128,128], index: 5, kind: input, shape index: {}]   ;;  %s1117_s4 = inlined_call_operand.vmem [shape: f32[1,128], index: 4, kind: input, shape index: {}]   ;;  %s1118_s8 = inlined_call_operand.<no memory space> [shape: f32[1,1], index: 8, kind: input, shape index: {}]   ;;  %s1119_s6 = inlined_call_operand.vmem [shape: f32[1,128], index: 6, kind: input, shape index: {}]   ;;  %s1120_s7 = inlined_call_operand.vmem [shape: bf16[1,128], index: 7, kind: input, shape index: {}]   ;;  %s1121_s9 = inlined_call_operand.vmem [shape: f32[1,128], index: 9, kind: output, shape index: {}]  }
   0x1   :  { %v69_v0 = vld [vmem:[%s1112_s3] sm:$0x3]  ;;  %v900_v5 = vld [vmem:[%s1114_s1 + $0x8] sm:$0xff]   ;;  %v903_v8 = vld [vmem:[%s1114_s1 + $0x10] sm:$0xff]   ;;  %vm924_vm4 = vmmov 0  }
   0x2   :  { %892 = vmatprep.subr.msk.bf16.mxu1 %vm135_vm0, %v69_v0  ;;  %v137_v1 = vsel %vm135_vm0, %v69_v0, 0  ;;  %v898_v2 = vld [vmem:[%s1113_s2] sm:$0x3f]   ;;  %v902_v7 = vld [vmem:[%s1115_s0 + $0x8] sm:$0xff]   ;;  %v904_v9 = vld [vmem:[%s1115_s0 + $0x10] sm:$0xff]  }
   0x3   :  { %v899_v3 = vld [vmem:[%s1114_s1] sm:$0xff]   ;;  %789 = vmatpush3.bf16.msra.mxu1 %v137_v1  ;;  %893 = vmatprep.subr.msk.bf16.mxu0 %vm306_vm1, %v898_v2  ;;  %v308_v4 = vsel %vm306_vm1, %v898_v2, 0  ;;  %v905_v10 = vld [vmem:[%s1114_s1 + $0x18] sm:$0xff]   ;;  %v909_v14 = vld [vmem:[%s1114_s1 + $0x28] sm:$0xff]  }
   0x4   :  { %790 = vmatprep.mubr.msk.bf16.mxu1 %vm110_vm2, %v899_v3  ;;  %807 = vmatpush3.bf16.msra.mxu0 %v308_v4  ;;  %v901_v6 = vld [vmem:[%s1115_s0] sm:$0xff]   ;;  %v906_v12 = vld [vmem:[%s1115_s0 + $0x18] sm:$0xff]   ;;  %v910_v15 = vld [vmem:[%s1115_s0 + $0x28] sm:$0xff]  }
   0x5   :  { %808 = vmatprep.mubr.msk.bf16.mxu0 %vm281_vm3, %v901_v6  ;;  %v907_v11 = vld [vmem:[%s1114_s1 + $0x20] sm:$0xff]   ;;  %v911_v16 = vld [vmem:[%s1114_s1 + $0x30] sm:$0xff]   ;;  %v916_v18 = vld [vmem:[%s1116_s5 + $0x8] sm:$0xff]  }
   0x6   :  { %791 = vmatmul.mubr.msk.bf16.vlgmr.msra.gmra.mrb[0].mxu1 %vm110_vm2, %v900_v5  ;;  %v908_v13 = vld [vmem:[%s1115_s0 + $0x20] sm:$0xff]   ;;  %v912_v19 = vld [vmem:[%s1115_s0 + $0x30] sm:$0xff]   ;;  %v913_v21 = vld [vmem:[%s1114_s1 + $0x38] sm:$0xff]  }
   0x7   :  { %809 = vmatmul.mubr.msk.bf16.vlgmr.msra.gmra.mrb[0].mxu0 %vm281_vm3, %v902_v7  ;;  %794 = vmatprep.mubr.msk.bf16.mxu1 %vm110_vm2, %v903_v8  ;;  %v915_v17 = vld [vmem:[%s1116_s5] sm:$0xff]   ;;  %v917_v20 = vld [vmem:[%s1116_s5 + $0x10] sm:$0xff]   ;;  %v918_v22 = vld [vmem:[%s1116_s5 + $0x18] sm:$0xff]  }
   0x8   :  { %812 = vmatprep.mubr.msk.bf16.mxu0 %vm281_vm3, %v904_v9  ;;  %824 = vmatprep.subr.bf16.mxu0 %v915_v17  ;;  %v914_v23 = vld [vmem:[%s1115_s0 + $0x38] sm:$0xff]   ;;  %v919_v24 = vld [vmem:[%s1116_s5 + $0x20] sm:$0xff]   ;;  %v920_v25 = vld [vmem:[%s1116_s5 + $0x28] sm:$0xff]  }
   0x9   :  { %825 = vmatpush3.bf16.msra.mxu0 %v915_v17  ;;  %v921_v26 = vld [vmem:[%s1116_s5 + $0x30] sm:$0xff]   ;;  %v922_v27 = vld [vmem:[%s1116_s5 + $0x38] sm:$0xff]   ;;  %v1073_v32 = vld [vmem:[%s1117_s4] ss:$0 sm:$0xff] }
   0xa   :  { %826 = vmatprep.subr.bf16.mxu0 %v916_v18 }
   0xd   :  { %827 = vmatpush3.bf16.msra.mxu0 %v916_v18 }
   0xe   :  { %795 = vmatmul.mubr.msk.bf16.gmra.mrb[4].mxu1 %vm110_vm2, %v905_v10  ;;  %828 = vmatprep.subr.bf16.mxu0 %v917_v20 }
   0xf   :  { %798 = vmatprep.mubr.msk.bf16.mxu1 %vm110_vm2, %v907_v11  ;;  %813 = vmatmul.mubr.msk.bf16.gmra.mrb[4].mxu0 %vm281_vm3, %v906_v12 }
  0x10   :  { %816 = vmatprep.mubr.msk.bf16.mxu0 %vm281_vm3, %v908_v13 }
  0x11   :  { %829 = vmatpush3.bf16.msra.mxu0 %v917_v20 }
  0x12   :  { %830 = vmatprep.subr.bf16.mxu0 %v918_v22 }
  0x15   :  { %831 = vmatpush3.bf16.msra.mxu0 %v918_v22 }
  0x16   :  { %799 = vmatmul.mubr.msk.bf16.gmra.mrb[8].mxu1 %vm110_vm2, %v909_v14  ;;  %832 = vmatprep.subr.bf16.mxu0 %v919_v24 }
  0x17   :  { %802 = vmatprep.mubr.msk.bf16.mxu1 %vm110_vm2, %v911_v16  ;;  %817 = vmatmul.mubr.msk.bf16.gmra.mrb[8].mxu0 %vm281_vm3, %v910_v15 }
  0x18   :  { %820 = vmatprep.mubr.msk.bf16.mxu0 %vm281_vm3, %v912_v19 }
  0x19   :  { %833 = vmatpush3.bf16.msra.mxu0 %v919_v24 }
  0x1a   :  { %834 = vmatprep.subr.bf16.mxu0 %v920_v25 }
  0x1d   :  { %835 = vmatpush3.bf16.msra.mxu0 %v920_v25 }
  0x1e   :  { %803 = vmatmul.mubr.msk.bf16.gmra.mrb[12].mxu1 %vm110_vm2, %v913_v21  ;;  %836 = vmatprep.subr.bf16.mxu0 %v921_v26 }
  0x1f   :  { %821 = vmatmul.mubr.msk.bf16.gmra.mrb[12].mxu0 %vm281_vm3, %v914_v23 }
  0x21   :  { %837 = vmatpush3.bf16.msra.mxu0 %v921_v26 }
  0x22   :  { %838 = vmatprep.subr.bf16.mxu0 %v922_v27 }
  0x25   :  { %839 = vmatpush3.bf16.msra.mxu0 %v922_v27 }
  0xd9   :  { %v792_v28 = vpop.f32.mrb[0].mxu1 }
  0xda   :  { %v173_v29 = vpop.f32.mrb[1].mxu1  ;;  %v810_v31 = vpop.f32.mrb[0].mxu0 }
  0xdb   :  { %v793_v30 = vpop.f32.mrb[2].mxu1  ;;  %v353_v33 = vadd.f32 %v810_v31, %v792_v28  ;;  %v344_v35 = vpop.f32.mrb[1].mxu0 }
  0xdc   :  { %v176_v34 = vpop.f32.mrb[3].mxu1  ;;  %v345_v36 = vadd.f32 %v344_v35, %v173_v29  ;;  %v811_v37 = vpop.f32.mrb[2].mxu0 }
  0xdd   :  { %v416_v38 = vadd.f32 %v1073_v32, %v353_v33  ;;  %v356_v39 = vadd.f32 %v811_v37, %v793_v30  ;;  %v347_v40 = vpop.f32.mrb[3].mxu0 }
  0xde   :  { %v414_v41 = vadd.f32 %v1073_v32, %v345_v36  ;;  %v348_v42 = vadd.f32 %v347_v40, %v176_v34 }
  0xdf   :  { %v417_v43 = vadd.f32 %v1073_v32, %v356_v39  ;;  %v432_v46 = vmax.f32 %v416_v38, 0.0 }
  0xe0   :  { %v415_v44 = vadd.f32 %v1073_v32, %v348_v42  ;;  %v430_v49 = vmax.f32 %v414_v41, 0.0 }
  0xe1   :  { %v796_v45 = vpop.f32.mrb[4].mxu1  ;;  %v433_v47 = vmax.f32 %v417_v43, 0.0 }
  0xe2   :  { %v189_v48 = vpop.f32.mrb[5].mxu1  ;;  %v431_v50 = vmax.f32 %v415_v44, 0.0  ;;  %v814_v51 = vpop.f32.mrb[4].mxu0 }
  0xe3   :  { %v797_v52 = vpop.f32.mrb[6].mxu1  ;;  %v447_v53 = vpack.c.bf16 %v433_v47, %v432_v46  ;;  %v369_v54 = vadd.f32 %v814_v51, %v796_v45  ;;  %v360_v55 = vpop.f32.mrb[5].mxu0 }
  0xe4   :  { %v192_v56 = vpop.f32.mrb[7].mxu1  ;;  %v361_v57 = vadd.f32 %v360_v55, %v189_v48  ;;  %v815_v58 = vpop.f32.mrb[6].mxu0  ;;  %v446_v59 = vpack.c.bf16 %v431_v50, %v430_v49  ;;  %v925_v55 = vmov 0  }
  0xe5   :  { %v420_v60 = vadd.f32 %v1073_v32, %v369_v54  ;;  %v372_v61 = vadd.f32 %v815_v58, %v797_v52  ;;  %v363_v62 = vpop.f32.mrb[7].mxu0  ;;  %v923_v54 = vmov 0.0   ;;  %897 = vset.pattern.permute.xlu0 %v925_v55 }
  0xe6   :  { %v418_v63 = vadd.f32 %v1073_v32, %v361_v57  ;;  %v364_v0 = vadd.f32 %v363_v62, %v192_v56  ;;  %840 = vmatprep.mubr.bf16.mxu0 %v446_v59  ;;  %856 = vmatprep.subr.bf16.mxu1 %v923_v54  ;;  %v14_v56 = vstv %s1118_s8  ;;  %v736_v57 = vld [vmem:[%s1119_s6] ss:$0 sm:$0xff] }
  0xe7   :  { %v436_v1 = vmax.f32 %v420_v60, 0.0  ;;  %v421_v2 = vadd.f32 %v1073_v32, %v372_v61  ;;  %841 = vmatmul.mubr.bf16.vlgmr.msra.gmra.mrb[16].mxu0 %v447_v53  ;;  %872 = vmatprep.mubr.msk.bf16.mxu1 %vm924_vm4, %v923_v54  ;;  %15 = vst [vmem:[#allocation2] sm:$0x1] %v14_v56 }
  0xe8   :  { %v434_v3 = vmax.f32 %v418_v63, 0.0  ;;  %v419_v4 = vadd.f32 %v1073_v32, %v364_v0 }
  0xe9   :  { %v800_v5 = vpop.f32.mrb[8].mxu1  ;;  %v437_v6 = vmax.f32 %v421_v2, 0.0 }
  0xea   :  { %v205_v7 = vpop.f32.mrb[9].mxu1  ;;  %v435_v8 = vmax.f32 %v419_v4, 0.0  ;;  %v818_v9 = vpop.f32.mrb[8].mxu0 }
  0xeb   :  { %v801_v10 = vpop.f32.mrb[10].mxu1  ;;  %v449_v11 = vpack.c.bf16 %v437_v6, %v436_v1  ;;  %v385_v12 = vadd.f32 %v818_v9, %v800_v5  ;;  %v376_v13 = vpop.f32.mrb[9].mxu0 }
  0xec   :  { %v208_v14 = vpop.f32.mrb[11].mxu1  ;;  %v448_v15 = vpack.c.bf16 %v435_v8, %v434_v3  ;;  %v377_v16 = vadd.f32 %v376_v13, %v205_v7  ;;  %v819_v17 = vpop.f32.mrb[10].mxu0 }
  0xed   :  { %v424_v18 = vadd.f32 %v1073_v32, %v385_v12  ;;  %v388_v19 = vadd.f32 %v819_v17, %v801_v10  ;;  %v379_v20 = vpop.f32.mrb[11].mxu0 }
  0xee   :  { %844 = vmatprep.mubr.bf16.mxu0 %v448_v15  ;;  %v422_v21 = vadd.f32 %v1073_v32, %v377_v16  ;;  %v380_v22 = vadd.f32 %v379_v20, %v208_v14 }
  0xef   :  { %845 = vmatmul.mubr.bf16.gmra.mrb[20].mxu0 %v449_v11  ;;  %v440_v23 = vmax.f32 %v424_v18, 0.0  ;;  %v425_v24 = vadd.f32 %v1073_v32, %v388_v19 }
  0xf0   :  { %v438_v25 = vmax.f32 %v422_v21, 0.0  ;;  %v423_v26 = vadd.f32 %v1073_v32, %v380_v22 }
  0xf1   :  { %v804_v27 = vpop.f32.mrb[12].mxu1  ;;  %v441_v28 = vmax.f32 %v425_v24, 0.0 }
  0xf2   :  { %v221_v29 = vpop.f32.mrb[13].mxu1  ;;  %v439_v30 = vmax.f32 %v423_v26, 0.0  ;;  %v822_v31 = vpop.f32.mrb[12].mxu0 }
  0xf3   :  { %v805_v33 = vpop.f32.mrb[14].mxu1  ;;  %v451_v34 = vpack.c.bf16 %v441_v28, %v440_v23  ;;  %v401_v35 = vadd.f32 %v822_v31, %v804_v27  ;;  %v392_v36 = vpop.f32.mrb[13].mxu0 }
  0xf4   :  { %v224_v37 = vpop.f32.mrb[15].mxu1  ;;  %v450_v38 = vpack.c.bf16 %v439_v30, %v438_v25  ;;  %v393_v39 = vadd.f32 %v392_v36, %v221_v29  ;;  %v823_v40 = vpop.f32.mrb[14].mxu0 }
  0xf5   :  { %v428_v41 = vadd.f32 %v1073_v32, %v401_v35  ;;  %v404_v42 = vadd.f32 %v823_v40, %v805_v33  ;;  %v395_v43 = vpop.f32.mrb[15].mxu0 }
  0xf6   :  { %848 = vmatprep.mubr.bf16.mxu0 %v450_v38  ;;  %v426_v44 = vadd.f32 %v1073_v32, %v393_v39  ;;  %v396_v45 = vadd.f32 %v395_v43, %v224_v37 }
  0xf7   :  { %849 = vmatmul.mubr.bf16.gmra.mrb[24].mxu0 %v451_v34  ;;  %v444_v46 = vmax.f32 %v428_v41, 0.0  ;;  %v429_v47 = vadd.f32 %v1073_v32, %v404_v42 }
  0xf8   :  { %v442_v48 = vmax.f32 %v426_v44, 0.0  ;;  %v427_v49 = vadd.f32 %v1073_v32, %v396_v45  ;;  %v647_v32 = vld [vmem:[#allocation2] sm:$0x1] }
  0xf9   :  { %v445_v50 = vmax.f32 %v429_v47, 0.0  ;;  %650 = vperm.xlu0 %897, %v647_v32  }
  0xfa   :  { %v443_v51 = vmax.f32 %v427_v49, 0.0 }
  0xfb   :  { %v453_v52 = vpack.c.bf16 %v445_v50, %v444_v46 }
  0xfc   :  { %v452_v53 = vpack.c.bf16 %v443_v51, %v442_v48  ;;  %v646_v51 = vld [vmem:[%s1120_s7] sm:$0x1] }
  0xfe   :  { %852 = vmatprep.mubr.bf16.mxu0 %v452_v53 }
  0xff   :  { %853 = vmatmul.mubr.bf16.gmra.mrb[28].mxu0 %v453_v52  ;;  %v653_v52 = vlaneseq }
 0x101   :  { %v654_v53 = vshrl.u32 %v653_v52, 7 }
 0x103   :  { %v655_v55 = vsub.s32 0, %v654_v53 }
 0x178   :  { %v651_v56 = vpop.permute.xlu0 %650 }
 0x179   :  { %v656_v32 = vrot.slane %v651_v56, %v655_v55 }
 0x1ba   :  { %v842_v58 = vpop.f32.mrb[16].mxu0 }
 0x1bb   :  { %v568_v59 = vadd.f32 %v842_v58, %v736_v57  ;;  %v559_v60 = vpop.f32.mrb[17].mxu0 }
 0x1bc   :  { %v560_v61 = vadd.f32 %v736_v57, %v559_v60  ;;  %v843_v62 = vpop.f32.mrb[18].mxu0 }
 0x1bd   :  { %v571_v63 = vadd.f32 %v843_v62, %v736_v57  ;;  %v562_v0 = vpop.f32.mrb[19].mxu0  ;;  %v624_v2 = vmax.f32 %v568_v59, 0.0 }
 0x1be   :  { %v563_v1 = vadd.f32 %v736_v57, %v562_v0  ;;  %v622_v4 = vmax.f32 %v560_v61, 0.0 }
 0x1bf   :  { %v625_v3 = vmax.f32 %v571_v63, 0.0 }
 0x1c0   :  { %v623_v5 = vmax.f32 %v563_v1, 0.0 }
 0x1c1   :  { %v639_v6 = vpack.c.bf16 %v625_v3, %v624_v2 }
 0x1c2   :  { %v638_v7 = vpack.c.bf16 %v623_v5, %v622_v4  ;;  %v846_v8 = vpop.f32.mrb[20].mxu0 }
 0x1c3   :  { %v584_v9 = vadd.f32 %v846_v8, %v736_v57  ;;  %v575_v10 = vpop.f32.mrb[21].mxu0 }
 0x1c4   :  { %v576_v11 = vadd.f32 %v736_v57, %v575_v10  ;;  %857 = vmatpush3.bf16.xpose.msra.mxu1 %v638_v7  ;;  %v847_v12 = vpop.f32.mrb[22].mxu0 }
 0x1c5   :  { %v628_v13 = vmax.f32 %v584_v9, 0.0  ;;  %v587_v14 = vadd.f32 %v847_v12, %v736_v57  ;;  %v578_v15 = vpop.f32.mrb[23].mxu0  ;;  %858 = vmatprep.subr.bf16.mxu1 %v923_v54 }
 0x1c6   :  { %v626_v16 = vmax.f32 %v576_v11, 0.0  ;;  %v579_v17 = vadd.f32 %v736_v57, %v578_v15 }
 0x1c7   :  { %v629_v18 = vmax.f32 %v587_v14, 0.0 }
 0x1c8   :  { %v627_v19 = vmax.f32 %v579_v17, 0.0 }
 0x1c9   :  { %v641_v20 = vpack.c.bf16 %v629_v18, %v628_v13 }
 0x1ca   :  { %v640_v21 = vpack.c.bf16 %v627_v19, %v626_v16  ;;  %v850_v22 = vpop.f32.mrb[24].mxu0 }
 0x1cb   :  { %v600_v23 = vadd.f32 %v850_v22, %v736_v57  ;;  %v591_v24 = vpop.f32.mrb[25].mxu0 }
 0x1cc   :  { %859 = vmatpush3.bf16.xpose.msra.mxu1 %v639_v6  ;;  %v592_v25 = vadd.f32 %v736_v57, %v591_v24  ;;  %v851_v26 = vpop.f32.mrb[26].mxu0 }
 0x1cd   :  { %v632_v27 = vmax.f32 %v600_v23, 0.0  ;;  %860 = vmatprep.subr.bf16.mxu1 %v923_v54  ;;  %v603_v28 = vadd.f32 %v851_v26, %v736_v57  ;;  %v594_v29 = vpop.f32.mrb[27].mxu0 }
 0x1ce   :  { %v630_v30 = vmax.f32 %v592_v25, 0.0  ;;  %v595_v31 = vadd.f32 %v736_v57, %v594_v29 }
 0x1cf   :  { %v633_v33 = vmax.f32 %v603_v28, 0.0 }
 0x1d0   :  { %v631_v34 = vmax.f32 %v595_v31, 0.0 }
 0x1d1   :  { %v643_v35 = vpack.c.bf16 %v633_v33, %v632_v27 }
 0x1d2   :  { %v642_v36 = vpack.c.bf16 %v631_v34, %v630_v30  ;;  %v854_v37 = vpop.f32.mrb[28].mxu0 }
 0x1d3   :  { %v616_v38 = vadd.f32 %v854_v37, %v736_v57  ;;  %v607_v39 = vpop.f32.mrb[29].mxu0 }
 0x1d4   :  { %861 = vmatpush3.bf16.xpose.msra.mxu1 %v640_v21  ;;  %v608_v40 = vadd.f32 %v736_v57, %v607_v39  ;;  %v855_v41 = vpop.f32.mrb[30].mxu0 }
 0x1d5   :  { %862 = vmatprep.subr.bf16.mxu1 %v923_v54  ;;  %v636_v42 = vmax.f32 %v616_v38, 0.0  ;;  %v619_v43 = vadd.f32 %v855_v41, %v736_v57  ;;  %v610_v44 = vpop.f32.mrb[31].mxu0 }
 0x1d6   :  { %v634_v45 = vmax.f32 %v608_v40, 0.0  ;;  %v611_v46 = vadd.f32 %v736_v57, %v610_v44 }
 0x1d7   :  { %v637_v47 = vmax.f32 %v619_v43, 0.0 }
 0x1d8   :  { %v635_v48 = vmax.f32 %v611_v46, 0.0 }
 0x1d9   :  { %v645_v49 = vpack.c.bf16 %v637_v47, %v636_v42 }
 0x1da   :  { %v644_v50 = vpack.c.bf16 %v635_v48, %v634_v45 }
 0x1dc   :  { %863 = vmatpush3.bf16.xpose.msra.mxu1 %v641_v20 }
 0x1dd   :  { %864 = vmatprep.subr.bf16.mxu1 %v923_v54 }
 0x1e4   :  { %865 = vmatpush3.bf16.xpose.msra.mxu1 %v642_v36 }
 0x1e5   :  { %866 = vmatprep.subr.bf16.mxu1 %v923_v54 }
 0x1ec   :  { %867 = vmatpush3.bf16.xpose.msra.mxu1 %v643_v35 }
 0x1ed   :  { %868 = vmatprep.subr.bf16.mxu1 %v923_v54 }
 0x1f4   :  { %869 = vmatpush3.bf16.xpose.msra.mxu1 %v644_v50 }
 0x1f5   :  { %870 = vmatprep.subr.bf16.mxu1 %v923_v54 }
 0x1fc   :  { %871 = vmatpush3.bf16.xpose.msra.mxu1 %v645_v49 }
 0x203   :  { %873 = vmatmul.mubr.bf16.vlgmr.msra.gmra.mrb[16].mxu1 %v646_v51 }
 0x2d6   :  { %v691_v57 = vpop.f32.mrb[16].mxu1 }
 0x2d7   :  { %v692_v58 = vadd.f32 %v691_v57, %v656_v32  ;;  %v874_v59 = vpop.f32.mrb[17].mxu1 }
 0x2d8   :  { %v694_v60 = vpop.f32.mrb[18].mxu1 }
 0x2d9   :  { %697 = vst [vmem:[%s1121_s9] sm:$0x1] %v692_v58  ;;  %v875_v54 = vpop.f32.mrb[19].mxu1 }

</bundles_post_ra>
